<compile_context>
chip_gen: v7x
topology: tpu7x:2x2x1
jax: 0.10.0
libtpu: 0.0.40
codegen_flags: <defaults>
</compile_context>

<pallas_src>
import functools

import jax
import jax.numpy as jnp
from jax.experimental import pallas as pl
from jax.experimental.pallas import tpu as pltpu


def _encoder_kernel(z_ref, w1_ref, b1_ref, w2_ref, b2_ref, o_ref,
                    *, compute_dtype):
    # Layer 1: relu(z @ W1 + b1)
    z = z_ref[...]
    w1 = w1_ref[...]
    if compute_dtype != jnp.float32:
        z = z.astype(compute_dtype)
        w1 = w1.astype(compute_dtype)
    h = jnp.dot(z, w1, preferred_element_type=jnp.float32)
    h = jnp.maximum(h + b1_ref[...], 0.0)

    # Layer 2: relu(h @ W2 + b2)  -- 93% of the FLOPs live here.
    w2 = w2_ref[...]
    if compute_dtype != jnp.float32:
        h = h.astype(compute_dtype)
        w2 = w2.astype(compute_dtype)
    h = jnp.dot(h, w2, preferred_element_type=jnp.float32)
    h = jnp.maximum(h + b2_ref[...], 0.0)
    o_ref[...] = h.astype(o_ref.dtype)


def _round_up(n, m):
    return ((n + m - 1) // m) * m


def _num_tensorcores_per_chip():
    """v7x has 2 TensorCores per chip; v5e/v6e have 1."""
    try:
        kind = (jax.devices()[0].device_kind or "").lower()
    except Exception:
        return 1
    return 2 if "v7" in kind else 1


def _choose_batch_tile(batch, num_cores, tb_cap=1024):
    """Pick a batch tile that minimizes padding and keeps MXU passes full.

    * tb_cap (1024, multiple of 256) bounds per-step VMEM and amortizes the
      per-step pipeline overhead over a large matmul.
    * Balanced tiles: n_tiles = cdiv(B, cap) (plus a 2-way split on v7x when
      each half still covers a full 256-row MXU pass), then
      tb = round_up(cdiv(B, n_tiles), 8) -> <8 rows padding per tile.
    * Bump tb up to a multiple of 256 (or 128) only when the extra padding is
      small, so the final systolic pass is not mostly idle.
    """
    if batch <= 8:
        return 8

    n_tiles = pl.cdiv(batch, tb_cap)
    if num_cores > 1 and batch >= 2 * 256:
        # Only split for the v7x megacore, and only when each half fills at
        # least one full MXU pass.  On single-TC chips a split is just a
        # serial extra grid step.
        n_tiles = max(n_tiles, num_cores)

    tb = _round_up(pl.cdiv(batch, n_tiles), 8)

    # MXU-pass alignment (256 on v6e/v7x, 128 on v5e) when it is cheap.
    for align in (256, 128):
        tb_a = min(_round_up(tb, align), _round_up(tb_cap, align))
        extra_pad = n_tiles * tb_a - batch
        if tb_a >= tb and extra_pad <= max(align // 2, batch // 8):
            return tb_a
    return tb


def vector_encoder_with_action(x, action, params, *, tb=None, use_bf16=False,
                               discrete_action=False):
    """x: (B, obs_dim) f32, action: (B, action_size) f32 -> (B, hidden[-1]).

    use_bf16=True runs both matmuls in bf16 on the MXU with f32 accumulation
    (~1e-3 relative error); default is exact f32.
    """
    # TODO(synk): use_batch_norm / use_layernorm / dropout / use_dense branches
    # of the PyTorch module are off by default and not implemented here.
    B = x.shape[0]
    w1, b1, w2, b2 = params
    in_dim, h1 = w1.shape
    h2 = w2.shape[1]

    if discrete_action:
        action = jax.nn.one_hot(
            action.reshape(-1).astype(jnp.int32), in_dim - x.shape[1],
            dtype=x.dtype)
    assert x.shape[1] + action.shape[1] == in_dim

    if tb is None:
        tb = _choose_batch_tile(B, _num_tensorcores_per_chip())
    tb = max(8, _round_up(tb, 8))

    # Concat in the wrapper (single cheap XLA op; allow_input_fusion lets XLA
    # fuse it straight into the pallas_call operand) and pad the batch so it
    # divides the batch tile; padded rows are dropped at the end.
    z = jnp.concatenate([x, action], axis=1)
    Bp = _round_up(B, tb)
    if Bp != B:
        z = jnp.pad(z, ((0, Bp - B), (0, 0)))

    grid = (Bp // tb,)
    compute_dtype = jnp.bfloat16 if use_bf16 else jnp.float32

    cost = pl.CostEstimate(
        flops=2 * Bp * (in_dim * h1 + h1 * h2),
        transcendentals=0,
        bytes_accessed=4 * (Bp * in_dim + in_dim * h1 + h1
                            + h1 * h2 + h2 + Bp * h2),
    )

    out = pl.pallas_call(
        functools.partial(_encoder_kernel, compute_dtype=compute_dtype),
        out_shape=jax.ShapeDtypeStruct((Bp, h2), jnp.float32),
        grid_spec=pltpu.PrefetchScalarGridSpec(
            num_scalar_prefetch=0,
            grid=grid,
            in_specs=[
                pl.BlockSpec((tb, in_dim), lambda i: (i, 0)),   # z tile
                pl.BlockSpec((in_dim, h1), lambda i: (0, 0)),   # W1 (resident)
                pl.BlockSpec((1, h1), lambda i: (0, 0)),        # b1
                pl.BlockSpec((h1, h2), lambda i: (0, 0)),       # W2 (resident)
                pl.BlockSpec((1, h2), lambda i: (0, 0)),        # b2
            ],
            out_specs=pl.BlockSpec((tb, h2), lambda i: (i, 0)),
        ),
        compiler_params=pltpu.CompilerParams(
            dimension_semantics=("parallel",),
            allow_input_fusion=[True, False, False, False, False],
        ),
        cost_estimate=cost,
    )(z, w1, b1, w2, b2)
    return out[:B]


def init_params(key, obs_dim, action_size, hidden_units=(256, 256)):
    """Deterministic init mimicking nn.Linear default U(-1/sqrt(in), 1/sqrt(in)).

    Weights are stored as (in, out) (transposed from PyTorch's (out, in)).
    """
    in0 = obs_dim + action_size
    h1, h2 = hidden_units
    k1, k2, k3, k4 = jax.random.split(key, 4)
    s1 = 1.0 / jnp.sqrt(in0)
    s2 = 1.0 / jnp.sqrt(h1)
    w1 = jax.random.uniform(k1, (in0, h1), jnp.float32, -s1, s1)
    b1 = jax.random.uniform(k2, (1, h1), jnp.float32, -s1, s1)
    w2 = jax.random.uniform(k3, (h1, h2), jnp.float32, -s2, s2)
    b2 = jax.random.uniform(k4, (1, h2), jnp.float32, -s2, s2)
    return (w1, b1, w2, b2)


def reference_forward(x, action, params):
    w1, b1, w2, b2 = params
    z = jnp.concatenate([x, action], axis=1)
    h = jnp.maximum(z @ w1 + b1, 0.0)
    h = jnp.maximum(h @ w2 + b2, 0.0)
    return h


if __name__ == "__main__":
    key = jax.random.PRNGKey(0)
    kp = jax.random.fold_in(key, 123)

    obs_dim, action_size = 16, 4
    hidden_units = (256, 256)
    params = init_params(kp, obs_dim, action_size, hidden_units)

    fwd_f32 = jax.jit(lambda xx, aa: vector_encoder_with_action(xx, aa, params))
    fwd_bf16 = jax.jit(
        lambda xx, aa: vector_encoder_with_action(xx, aa, params, use_bf16=True))

    # B=8: single minimal tile.  B=200: single MXU-aligned tile + padding.
    # B=1025: multi-tile grid exercising the padding-minimizing tile choice.
    for B in (8, 200, 1025):
        kx_b, ka_b = jax.random.split(jax.random.fold_in(key, B))
        x = jax.random.normal(kx_b, (B, obs_dim), jnp.float32)
        action = jax.random.normal(ka_b, (B, action_size), jnp.float32)

        out = jax.block_until_ready(fwd_f32(x, action))
        ref = reference_forward(x, action, params)
        assert out.shape == (B, hidden_units[-1])
        assert jnp.allclose(out, ref, atol=1e-5, rtol=1e-5), f"f32 mismatch B={B}"

    # Optional bf16 MXU path (faster, ~1e-3 relative error).
    B = 200
    kx_b, ka_b = jax.random.split(jax.random.fold_in(key, B))
    x = jax.random.normal(kx_b, (B, obs_dim), jnp.float32)
    action = jax.random.normal(ka_b, (B, action_size), jnp.float32)
    out_bf16 = jax.block_until_ready(fwd_bf16(x, action))
    ref = reference_forward(x, action, params)
    assert jnp.allclose(out_bf16, ref, atol=5e-2, rtol=5e-2), "bf16 mismatch"

    print("KERNEL_OK")
</pallas_src>

<mosaic_0001>
module attributes {stable_mosaic.version = 11 : i64} {
  func.func @_encoder_kernel(%arg0: i32, %arg1: memref<8x20xf32, #tpu.memory_space<vmem>>, %arg2: memref<20x256xf32, #tpu.memory_space<vmem>>, %arg3: memref<1x256xf32, #tpu.memory_space<vmem>>, %arg4: memref<256x256xf32, #tpu.memory_space<vmem>>, %arg5: memref<1x256xf32, #tpu.memory_space<vmem>>, %arg6: memref<8x256xf32, #tpu.memory_space<vmem>>) attributes {dimension_semantics = [#tpu.dimension_semantics<parallel>], iteration_bounds = array<i64: 1>, scalar_prefetch = 0 : i64, scratch_operands = 0 : i64, tpu.core_type = #tpu.core_type<tc>, window_params = [{transform_indices = @transform_0, window_bounds = array<i64: 8, 20>}, {pipeline_mode = #tpu.pipeline_mode<synchronous>, transform_indices = @transform_1, window_bounds = array<i64: 20, 256>}, {pipeline_mode = #tpu.pipeline_mode<synchronous>, transform_indices = @transform_2, window_bounds = array<i64: 1, 256>}, {pipeline_mode = #tpu.pipeline_mode<synchronous>, transform_indices = @transform_3, window_bounds = array<i64: 256, 256>}, {pipeline_mode = #tpu.pipeline_mode<synchronous>, transform_indices = @transform_4, window_bounds = array<i64: 1, 256>}, {transform_indices = @transform_5, window_bounds = array<i64: 8, 256>}]} {
    %c0 = arith.constant 0 : index
    %c0_0 = arith.constant 0 : index
    %0 = vector.load %arg1[%c0, %c0_0] : memref<8x20xf32, #tpu.memory_space<vmem>>, vector<8x20xf32>
    %c0_1 = arith.constant 0 : index
    %c0_2 = arith.constant 0 : index
    %1 = vector.load %arg2[%c0_1, %c0_2] : memref<20x256xf32, #tpu.memory_space<vmem>>, vector<20x256xf32>
    %cst = arith.constant dense<0.000000e+00> : vector<8x256xf32>
    %2 = tpu.matmul %0, %1, %cst {dimension_numbers = #tpu.dot_dimension_numbers<[1], [0], [0], [1], [0, 0, 1, 1], [], []>} : vector<8x20xf32>, vector<20x256xf32>, vector<8x256xf32> -> vector<8x256xf32>
    %c0_3 = arith.constant 0 : index
    %c0_4 = arith.constant 0 : index
    %3 = vector.load %arg3[%c0_3, %c0_4] : memref<1x256xf32, #tpu.memory_space<vmem>>, vector<1x256xf32>
    %4 = vector.broadcast %3 : vector<1x256xf32> to vector<8x256xf32>
    %5 = arith.addf %2, %4 : vector<8x256xf32>
    %cst_5 = arith.constant 0.000000e+00 : f32
    %6 = vector.broadcast %cst_5 : f32 to vector<8x256xf32>
    %7 = arith.maximumf %5, %6 : vector<8x256xf32>
    %c0_6 = arith.constant 0 : index
    %c0_7 = arith.constant 0 : index
    %8 = vector.load %arg4[%c0_6, %c0_7] : memref<256x256xf32, #tpu.memory_space<vmem>>, vector<256x256xf32>
    %cst_8 = arith.constant dense<0.000000e+00> : vector<8x256xf32>
    %9 = tpu.matmul %7, %8, %cst_8 {dimension_numbers = #tpu.dot_dimension_numbers<[1], [0], [0], [1], [0, 0, 1, 1], [], []>} : vector<8x256xf32>, vector<256x256xf32>, vector<8x256xf32> -> vector<8x256xf32>
    %c0_9 = arith.constant 0 : index
    %c0_10 = arith.constant 0 : index
    %10 = vector.load %arg5[%c0_9, %c0_10] : memref<1x256xf32, #tpu.memory_space<vmem>>, vector<1x256xf32>
    %11 = vector.broadcast %10 : vector<1x256xf32> to vector<8x256xf32>
    %12 = arith.addf %9, %11 : vector<8x256xf32>
    %cst_11 = arith.constant 0.000000e+00 : f32
    %13 = vector.broadcast %cst_11 : f32 to vector<8x256xf32>
    %14 = arith.maximumf %12, %13 : vector<8x256xf32>
    %c0_12 = arith.constant 0 : index
    %c0_13 = arith.constant 0 : index
    %15 = vector.load %arg6[%c0_12, %c0_13] : memref<8x256xf32, #tpu.memory_space<vmem>>, vector<8x256xf32>
    tpu.vector_store %arg6[%c0_12, %c0_13], %14 {strides = array<i32>} : memref<8x256xf32, #tpu.memory_space<vmem>>, vector<8x256xf32>,
    return
  }
  func.func @transform_0(%arg0: i32) -> (i32, i32) {
    %c0_i32 = arith.constant 0 : i32
    %c0_i32_0 = arith.constant 0 : i32
    return %arg0, %c0_i32 : i32, i32
  }
  func.func @transform_1(%arg0: i32) -> (i32, i32) {
    %c0_i32 = arith.constant 0 : i32
    %c0_i32_0 = arith.constant 0 : i32
    %c0_i32_1 = arith.constant 0 : i32
    return %c0_i32, %c0_i32_0 : i32, i32
  }
  func.func @transform_2(%arg0: i32) -> (i32, i32) {
    %c0_i32 = arith.constant 0 : i32
    %c0_i32_0 = arith.constant 0 : i32
    %c0_i32_1 = arith.constant 0 : i32
    return %c0_i32, %c0_i32_0 : i32, i32
  }
  func.func @transform_3(%arg0: i32) -> (i32, i32) {
    %c0_i32 = arith.constant 0 : i32
    %c0_i32_0 = arith.constant 0 : i32
    %c0_i32_1 = arith.constant 0 : i32
    return %c0_i32, %c0_i32_0 : i32, i32
  }
  func.func @transform_4(%arg0: i32) -> (i32, i32) {
    %c0_i32 = arith.constant 0 : i32
    %c0_i32_0 = arith.constant 0 : i32
    %c0_i32_1 = arith.constant 0 : i32
    return %c0_i32, %c0_i32_0 : i32, i32
  }
  func.func @transform_5(%arg0: i32) -> (i32, i32) {
    %c0_i32 = arith.constant 0 : i32
    %c0_i32_0 = arith.constant 0 : i32
    return %arg0, %c0_i32 : i32, i32
  }
}

</mosaic_0001>

<bundles_post_ra>
// kernel: _lambda_.2
= control target key start
LH: loop header
LB: loop body
LE: loop exit
PB: predicated region body
PF: predicated region fallthrough
CT: control target
= control target key end

     0   :  { %s648_s0 = inlined_call_operand.hbm [shape: f32[20,256], index: 0, kind: input, shape index: {}]   ;;  %s649_s1 = inlined_call_operand.vmem [shape: f32[1,256], index: 1, kind: input, shape index: {}]   ;;  %s650_s2 = inlined_call_operand.hbm [shape: f32[256,256], index: 2, kind: input, shape index: {}]   ;;  %s651_s3 = inlined_call_operand.vmem [shape: f32[1,256], index: 3, kind: input, shape index: {}]   ;;  %s652_s4 = inlined_call_operand.vmem [shape: f32[8,4], index: 4, kind: input, shape index: {}]   ;;  %s653_s5 = inlined_call_operand.<no memory space> [shape: f32[], index: 5, kind: input, shape index: {}]   ;;  %s654_s6 = inlined_call_operand.vmem [shape: f32[8,16], index: 6, kind: input, shape index: {}]   ;;  %s655_s7 = inlined_call_operand.hbm [shape: f32[8,256], index: 7, kind: output, shape index: {}]  }
   0x1   :  { %v583_v0 = vstv %s653_s5 }
   0x2   :  { %14 = vsyncpa [#allocation13], 0 }
   0x3   :  { %15 = vsyncpa [#allocation16], 0 }
   0x4   :  { %16 = vsyncpa [#allocation14], 0  ;;  %s534_s26 = smov [#allocation12]   ;;  %s462_s30 = scalar_lea.hbm %s648_s0, 768 }
   0x5   :  { %s36_s27 = sshll.u32 %s534_s26, 4  ;;  %p463_p0 = scmp.ne.s32.totalorder %s648_s0, %s462_s30  ;;  %s37_s27 = int_to_ptr.vmem [resolvable:$true] %s36_s27 }
   0x6   :  { %p466_p1 = scmp.lt.u32.totalorder %s462_s30, %s648_s0 }
   0x8   :  { %p468_p2 = pnand %p466_p1, %p463_p0 }
   0xa   :  { %471 = shalt.err (!%p468_p2)
}
   0xb   :  { %s472_s5 = scalar_lea.vmem %s37_s27, 768  ;;  %p477_p4 = scmp.lt.s32.totalorder %s37_s27, %s37_s27 }
   0xc   :  { %p473_p3 = scmp.ne.s32.totalorder %s37_s27, %s472_s5  ;;  %p478_p5 = scmp.lt.s32.totalorder %s472_s5, %s472_s5 }
   0xe   :  { %p479_p6 = por %p478_p5, %p477_p4 }
  0x10   :  { %p480_p7 = pnand %p479_p6, %p473_p3 }
  0x12   :  { %483 = shalt.err (!%p480_p7)
}
  0x13   :  { %s535_s12 = smov 256   ;;  %s536_s13 = smov 16  }
  0x14   :  { %42 = dma.hbm_to_vmem [thread:$0]  %s648_s0, 768, %s37_s27, [#allocation13], %s535_s12, %s535_s12, %s536_s13  }
  0x15   :  { %s537_s16 = smov [#allocation15]   ;;  %s484_s20 = scalar_lea.hbm %s650_s2, 8192 }
  0x16   :  { %s50_s17 = sshll.u32 %s537_s16, 4  ;;  %p485_p8 = scmp.ne.s32.totalorder %s650_s2, %s484_s20  ;;  %s51_s17 = int_to_ptr.vmem [resolvable:$true] %s50_s17 }
  0x17   :  { %p488_p9 = scmp.lt.u32.totalorder %s484_s20, %s650_s2 }
  0x19   :  { %p490_p10 = pnand %p488_p9, %p485_p8 }
  0x1b   :  { %493 = shalt.err (!%p490_p10)
}
  0x1c   :  { %s494_s25 = scalar_lea.vmem %s51_s17, 8192  ;;  %p499_p12 = scmp.lt.s32.totalorder %s51_s17, %s51_s17 }
  0x1d   :  { %p495_p11 = scmp.ne.s32.totalorder %s51_s17, %s494_s25  ;;  %p500_p13 = scmp.lt.s32.totalorder %s494_s25, %s494_s25 }
  0x1f   :  { %p501_p0 = por %p500_p13, %p499_p12 }
  0x21   :  { %p502_p1 = pnand %p501_p0, %p495_p11 }
  0x23   :  { %505 = shalt.err (!%p502_p1)
}
  0x24   :  { %56 = dma.hbm_to_vmem [thread:$0]  %s650_s2, 8192, %s51_s17, [#allocation16], %s535_s12, %s535_s12, %s536_s13  }
  0x25   :  { %528 = dma.done.wait [#allocation13], 768  }
  0x26   :  { %529 = vsyncadd [#allocation13], 4294966528 }
  0x27   :  { %530 = dma.done.wait [#allocation16], 8192  }
  0x28   :  { %531 = vsyncadd [#allocation16], 4294959104  ;;  %v86_v1 = vlaneseq  ;;  %v538_v2 = vmov 0.0   ;;  %v85_v5 = vld [vmem:[%s652_s4] sm:$0xff]  ;;  %v111_v6 = vld [vmem:[#allocation12 + $0x8] sm:$0xff]  ;;  %vm132_vm2 = vcmask 1043456  }
  0x29   :  { %203 = vmatprep.mubr.f32.mxu0 %v538_v2  ;;  %v113_v7 = vld [vmem:[#allocation12 + $0x18] sm:$0xff]  ;;  %v110_v10 = vld [vmem:[#allocation12] sm:$0xff]  ;;  %v112_v11 = vld [vmem:[#allocation12 + $0x10] sm:$0xff]  ;;  %vm128_vm4 = vcmask 162816  }
  0x2a   :  { %v612_v3 = vand.u32 127, %v86_v1  ;;  %v388_v9 = vpack.c.bf16 %v113_v7, %v111_v6  ;;  %v390_v13 = vpack.c.bf16 %v112_v11, %v110_v10  ;;  %v115_v14 = vld [vmem:[#allocation12 + $0x28] sm:$0xf]  ;;  %v213_v15 = vld [vmem:[#allocation15 + $0x8] sm:$0xff]  ;;  %v114_v16 = vld [vmem:[#allocation12 + $0x20] sm:$0xf] }
  0x2b   :  { %v215_v17 = vld [vmem:[#allocation15 + $0x18] sm:$0xff]  ;;  %v212_v18 = vld [vmem:[#allocation15] sm:$0xff]  ;;  %v214_v19 = vld [vmem:[#allocation15 + $0x10] sm:$0xff] }
  0x2c   :  { %v88_v4 = vadd.s32 128, %v612_v3  ;;  %vm93_vm1 = vcmp.lt.s32.totalorder %v612_v3, 112  ;;  %389 = vmatprep.subr.bf16.mxu0 %v388_v9  ;;  %v392_v20 = vpack.c.bf16 %v215_v17, %v213_v15  ;;  %v394_v21 = vpack.c.bf16 %v214_v19, %v212_v18  ;;  %v217_v22 = vld [vmem:[#allocation15 + $0x28] sm:$0xff]  ;;  %v219_v23 = vld [vmem:[#allocation15 + $0x38] sm:$0xff]  ;;  %v216_v24 = vld [vmem:[#allocation15 + $0x20] sm:$0xff] }
  0x2d   :  { %391 = vmatpush1.bf16.msra.mxu0 %v390_v13  ;;  %v396_v25 = vpack.c.bf16 %v219_v23, %v217_v22  ;;  %v218_v26 = vld [vmem:[#allocation15 + $0x30] sm:$0xff]  ;;  %v221_v27 = vld [vmem:[#allocation15 + $0x48] sm:$0xff]  ;;  %v223_v28 = vld [vmem:[#allocation15 + $0x58] sm:$0xff]  ;;  %vm101_vm3 = vcmp.lt.s32.totalorder %v612_v3, 16  ;;  %v119_v3 = vshrl.u32 %v86_v1, 7 }
  0x2e   :  { %vm89_vm0 = vcmp.lt.s32.totalorder %v88_v4, 132  ;;  %385 = vmatprep.subr.msk.mxu0 %vm132_vm2, %v115_v14  ;;  %393 = vmatprep.subr.bf16.mxu1 %v392_v20  ;;  %v398_v29 = vpack.c.bf16 %v218_v26, %v216_v24  ;;  %v400_v30 = vpack.c.bf16 %v223_v28, %v221_v27  ;;  %v220_v31 = vld [vmem:[#allocation15 + $0x40] sm:$0xff]  ;;  %v222_v32 = vld [vmem:[#allocation15 + $0x50] sm:$0xff]  ;;  %v225_v33 = vld [vmem:[#allocation15 + $0x68] sm:$0xff] }
  0x2f   :  { %v90_v8 = vsel %vm89_vm0, %v85_v5, %v583_v0  ;;  %395 = vmatpush1.bf16.msra.mxu1 %v394_v21  ;;  %v227_v34 = vld [vmem:[#allocation15 + $0x78] sm:$0xff]  ;;  %v402_v35 = vpack.c.bf16 %v222_v32, %v220_v31  ;;  %v224_v37 = vld [vmem:[#allocation15 + $0x60] sm:$0xff]  ;;  %v226_v38 = vld [vmem:[#allocation15 + $0x70] sm:$0xff] }
  0x30   :  { %v94_v12 = vsel %vm93_vm1, %v90_v8, %v583_v0  ;;  %397 = vmatprep.subr.bf16.mxu1 %v396_v25  ;;  %v404_v36 = vpack.c.bf16 %v227_v34, %v225_v33  ;;  %v229_v39 = vld [vmem:[#allocation15 + $0x88] sm:$0xff]  ;;  %v231_v40 = vld [vmem:[#allocation15 + $0x98] sm:$0xff]  ;;  %v406_v41 = vpack.c.bf16 %v226_v38, %v224_v37  ;;  %v228_v43 = vld [vmem:[#allocation15 + $0x80] sm:$0xff] }
  0x31   :  { %95 = vrot.lane.b32.xlu0 %v94_v12, %s536_s13  ;;  %386 = vmatpush1.msk.msra.mxu0 %vm132_vm2, %v114_v16  ;;  %v408_v42 = vpack.c.bf16 %v231_v40, %v229_v39  ;;  %v230_v44 = vld [vmem:[#allocation15 + $0x90] sm:$0xff]  ;;  %v233_v45 = vld [vmem:[#allocation15 + $0xa8] sm:$0xff]  ;;  %v235_v46 = vld [vmem:[#allocation15 + $0xb8] sm:$0xff] }
  0x32   :  { %v410_v47 = vpack.c.bf16 %v230_v44, %v228_v43  ;;  %v412_v48 = vpack.c.bf16 %v235_v46, %v233_v45  ;;  %v232_v49 = vld [vmem:[#allocation15 + $0xa0] sm:$0xff]  ;;  %v234_v50 = vld [vmem:[#allocation15 + $0xb0] sm:$0xff]  ;;  %v237_v51 = vld [vmem:[#allocation15 + $0xc8] sm:$0xff] }
  0x33   :  { %399 = vmatpush1.bf16.msra.mxu1 %v398_v29  ;;  %v239_v52 = vld [vmem:[#allocation15 + $0xd8] sm:$0xff]  ;;  %v414_v53 = vpack.c.bf16 %v234_v50, %v232_v49  ;;  %v236_v55 = vld [vmem:[#allocation15 + $0xc0] sm:$0xff]  ;;  %v238_v56 = vld [vmem:[#allocation15 + $0xd0] sm:$0xff] }
  0x34   :  { %401 = vmatprep.subr.bf16.mxu1 %v400_v30  ;;  %v416_v54 = vpack.c.bf16 %v239_v52, %v237_v51  ;;  %v241_v57 = vld [vmem:[#allocation15 + $0xe8] sm:$0xff]  ;;  %v243_v58 = vld [vmem:[#allocation15 + $0xf8] sm:$0xff]  ;;  %v418_v59 = vpack.c.bf16 %v238_v56, %v236_v55  ;;  %v240_v61 = vld [vmem:[#allocation15 + $0xe0] sm:$0xff]  ;;  %v120_v55 = vsub.s32 0, %v119_v3  ;;  %v124_v56 = vsub.s32 1, %v119_v3 }
  0x35   :  { %v420_v60 = vpack.c.bf16 %v243_v58, %v241_v57  ;;  %v242_v62 = vld [vmem:[#allocation15 + $0xf0] sm:$0xff]  ;;  %v245_v63 = vld [vmem:[#allocation15 + $0x108] sm:$0xff]  ;;  %v247_v2 = vld [vmem:[#allocation15 + $0x118] sm:$0xff] }
  0x36   :  { %v422_v4 = vpack.c.bf16 %v242_v62, %v240_v61  ;;  %v424_v5 = vpack.c.bf16 %v247_v2, %v245_v63  ;;  %v244_v6 = vld [vmem:[#allocation15 + $0x100] sm:$0xff]  ;;  %v246_v7 = vld [vmem:[#allocation15 + $0x110] sm:$0xff]  ;;  %v249_v8 = vld [vmem:[#allocation15 + $0x128] sm:$0xff] }
  0x37   :  { %403 = vmatpush1.bf16.msra.mxu1 %v402_v35  ;;  %v251_v9 = vld [vmem:[#allocation15 + $0x138] sm:$0xff]  ;;  %v426_v10 = vpack.c.bf16 %v246_v7, %v244_v6  ;;  %v248_v12 = vld [vmem:[#allocation15 + $0x120] sm:$0xff]  ;;  %v250_v13 = vld [vmem:[#allocation15 + $0x130] sm:$0xff] }
  0x38   :  { %405 = vmatprep.subr.bf16.mxu1 %v404_v36  ;;  %v428_v11 = vpack.c.bf16 %v251_v9, %v249_v8  ;;  %v253_v14 = vld [vmem:[#allocation15 + $0x148] sm:$0xff]  ;;  %v255_v15 = vld [vmem:[#allocation15 + $0x158] sm:$0xff]  ;;  %v430_v16 = vpack.c.bf16 %v250_v13, %v248_v12  ;;  %v252_v18 = vld [vmem:[#allocation15 + $0x140] sm:$0xff] }
  0x39   :  { %v432_v17 = vpack.c.bf16 %v255_v15, %v253_v14  ;;  %v254_v19 = vld [vmem:[#allocation15 + $0x150] sm:$0xff]  ;;  %v257_v20 = vld [vmem:[#allocation15 + $0x168] sm:$0xff]  ;;  %v259_v21 = vld [vmem:[#allocation15 + $0x178] sm:$0xff] }
  0x3a   :  { %v434_v22 = vpack.c.bf16 %v254_v19, %v252_v18  ;;  %v436_v23 = vpack.c.bf16 %v259_v21, %v257_v20  ;;  %v256_v24 = vld [vmem:[#allocation15 + $0x160] sm:$0xff]  ;;  %v258_v25 = vld [vmem:[#allocation15 + $0x170] sm:$0xff]  ;;  %v261_v26 = vld [vmem:[#allocation15 + $0x188] sm:$0xff] }
  0x3b   :  { %407 = vmatpush1.bf16.msra.mxu1 %v406_v41  ;;  %v263_v27 = vld [vmem:[#allocation15 + $0x198] sm:$0xff]  ;;  %v438_v28 = vpack.c.bf16 %v258_v25, %v256_v24  ;;  %v260_v30 = vld [vmem:[#allocation15 + $0x180] sm:$0xff]  ;;  %v262_v31 = vld [vmem:[#allocation15 + $0x190] sm:$0xff] }
  0x3c   :  { %409 = vmatprep.subr.bf16.mxu1 %v408_v42  ;;  %v440_v29 = vpack.c.bf16 %v263_v27, %v261_v26  ;;  %v265_v32 = vld [vmem:[#allocation15 + $0x1a8] sm:$0xff]  ;;  %v267_v33 = vld [vmem:[#allocation15 + $0x1b8] sm:$0xff]  ;;  %v442_v34 = vpack.c.bf16 %v262_v31, %v260_v30  ;;  %v264_v36 = vld [vmem:[#allocation15 + $0x1a0] sm:$0xff] }
  0x3d   :  { %v444_v35 = vpack.c.bf16 %v267_v33, %v265_v32  ;;  %v266_v37 = vld [vmem:[#allocation15 + $0x1b0] sm:$0xff]  ;;  %v269_v38 = vld [vmem:[#allocation15 + $0x1c8] sm:$0xff]  ;;  %v271_v39 = vld [vmem:[#allocation15 + $0x1d8] sm:$0xff] }
  0x3e   :  { %v446_v40 = vpack.c.bf16 %v266_v37, %v264_v36  ;;  %v448_v41 = vpack.c.bf16 %v271_v39, %v269_v38  ;;  %v97_v42 = vld [vmem:[%s654_s6] sm:$0xff]  ;;  %v268_v46 = vld [vmem:[#allocation15 + $0x1c0] sm:$0xff]  ;;  %v273_v49 = vld [vmem:[#allocation15 + $0x1e8] sm:$0xff] }
  0x3f   :  { %411 = vmatpush1.bf16.msra.mxu1 %v410_v47  ;;  %v102_v43 = vsel %vm101_vm3, %v97_v42, %v583_v0  ;;  %v270_v47 = vld [vmem:[#allocation15 + $0x1d0] sm:$0xff]  ;;  %v275_v50 = vld [vmem:[#allocation15 + $0x1f8] sm:$0xff]  ;;  %v272_v52 = vld [vmem:[#allocation15 + $0x1e0] sm:$0xff] }
  0x40   :  { %413 = vmatprep.subr.bf16.mxu1 %v412_v48  ;;  %v450_v48 = vpack.c.bf16 %v270_v47, %v268_v46  ;;  %v452_v51 = vpack.c.bf16 %v275_v50, %v273_v49  ;;  %v116_v0 = vld [vmem:[%s649_s1] sm:$0x3]  ;;  %s539_s1 = smov [#allocation17]  }
  0x41   :  { %v121_v57 = vrot.slane %v116_v0, %v120_v55  ;;  %v125_v58 = vrot.slane %v116_v0, %v124_v56  ;;  %v276_v1 = vld [vmem:[%s651_s3] sm:$0x3]  ;;  %s369_s9 = sshll.u32 %s539_s1, 4  ;;  %s370_s9 = int_to_ptr.vmem [resolvable:$true] %s369_s9 }
  0x42   :  { %s506_s10 = scalar_lea.vmem %s370_s9, 256  ;;  %p511_p3 = scmp.lt.s32.totalorder %s370_s9, %s370_s9 }
  0x43   :  { %415 = vmatpush1.bf16.msra.mxu1 %v414_v53  ;;  %v274_v53 = vld [vmem:[#allocation15 + $0x1f0] sm:$0xff]  ;;  %p507_p2 = scmp.ne.s32.totalorder %s370_s9, %s506_s10  ;;  %p512_p4 = scmp.lt.s32.totalorder %s506_s10, %s506_s10 }
  0x44   :  { %417 = vmatprep.subr.bf16.mxu1 %v416_v54  ;;  %v454_v54 = vpack.c.bf16 %v274_v53, %v272_v52 }
  0x45   :  { %p513_p5 = por %p512_p4, %p511_p3 }
  0x47   :  { %419 = vmatpush1.bf16.msra.mxu1 %v418_v59  ;;  %p514_p6 = pnand %p513_p5, %p507_p2 }
  0x48   :  { %421 = vmatprep.subr.bf16.mxu1 %v420_v60 }
  0x4b   :  { %423 = vmatpush1.bf16.msra.mxu1 %v422_v4  ;;  %v281_v4 = vrot.slane %v276_v1, %v120_v55 }
  0x4c   :  { %425 = vmatprep.subr.bf16.mxu1 %v424_v5  ;;  %v285_v5 = vrot.slane %v276_v1, %v124_v56 }
  0x4f   :  { %427 = vmatpush1.bf16.msra.mxu1 %v426_v10 }
  0x50   :  { %429 = vmatprep.subr.bf16.mxu1 %v428_v11 }
  0x53   :  { %431 = vmatpush1.bf16.msra.mxu1 %v430_v16 }
  0x54   :  { %433 = vmatprep.subr.bf16.mxu1 %v432_v17 }
  0x57   :  { %435 = vmatpush1.bf16.msra.mxu1 %v434_v22 }
  0x58   :  { %437 = vmatprep.subr.bf16.mxu1 %v436_v23 }
  0x5b   :  { %439 = vmatpush1.bf16.msra.mxu1 %v438_v28 }
  0x5c   :  { %441 = vmatprep.subr.bf16.mxu1 %v440_v29 }
  0x5f   :  { %443 = vmatpush1.bf16.msra.mxu1 %v442_v34 }
  0x60   :  { %445 = vmatprep.subr.bf16.mxu1 %v444_v35 }
  0x63   :  { %447 = vmatpush1.bf16.msra.mxu1 %v446_v40 }
  0x64   :  { %449 = vmatprep.subr.bf16.mxu1 %v448_v41 }
  0x67   :  { %451 = vmatpush1.bf16.msra.mxu1 %v450_v48 }
  0x68   :  { %453 = vmatprep.subr.bf16.mxu1 %v452_v51 }
  0x6b   :  { %455 = vmatpush1.bf16.msra.mxu1 %v454_v54 }
  0xa3   :  { %v96_v44 = vpop.permute.xlu0 %95 }
  0xa4   :  { %v105_v45 = vmax.f32 %v102_v43, %v96_v44 }
  0xa6   :  { %387 = vmatmul.mubr.msk.f32.vlgmr.msra.gmra.mrb[0].mxu0 %vm128_vm4, %v105_v45 }
 0x179   :  { %v205_v59 = vpop.f32.mrb[0].mxu0 }
 0x17a   :  { %v206_v60 = vadd.f32 %v205_v59, %v121_v57  ;;  %v207_v61 = vpop.f32.mrb[1].mxu0 }
 0x17b   :  { %v208_v62 = vadd.f32 %v207_v61, %v125_v58 }
 0x17c   :  { %v210_v2 = vmax.f32 %v206_v60, 0.0 }
 0x17d   :  { %v211_v63 = vmax.f32 %v208_v62, 0.0 }
 0x17f   :  { %352 = vmatprep.mubr.f32.mxu1 %v211_v63 }
 0x180   :  { %353 = vmatmul.mubr.f32.vlgmr.msra.gmra.mrb[0].mxu1 %v210_v2 }
 0x253   :  { %v354_v6 = vpop.f32.mrb[0].mxu1 }
 0x254   :  { %v355_v7 = vadd.f32 %v354_v6, %v281_v4  ;;  %v356_v8 = vpop.f32.mrb[1].mxu1 }
 0x255   :  { %v357_v9 = vadd.f32 %v356_v8, %v285_v5 }
 0x256   :  { %v359_v10 = vmax.f32 %v355_v7, 0.0 }
 0x257   :  { %v360_v11 = vmax.f32 %v357_v9, 0.0 }
 0x258   :  { %361 = vst [vmem:[#allocation17] sm:$0xff] %v359_v10 }
 0x259   :  { %362 = vst [vmem:[#allocation17 + $0x8] sm:$0xff] %v360_v11 }
 0x25a   :  { %517 = shalt.err (!%p514_p6)
}
 0x25b   :  { %s518_s5 = scalar_lea.hbm %s655_s7, 256 }
 0x25c   :  { %p519_p7 = scmp.ne.s32.totalorder %s655_s7, %s518_s5  ;;  %p522_p8 = scmp.lt.u32.totalorder %s518_s5, %s655_s7 }
 0x25e   :  { %p524_p9 = pnand %p522_p8, %p519_p7 }
 0x260   :  { %527 = shalt.err (!%p524_p9)
}
 0x261   :  { %372 = dma.vmem_to_hbm [thread:$0]  %s370_s9, 256, %s655_s7, [#allocation14]  }
 0x262   :  { %532 = dma.done.wait [#allocation14], 256  }
 0x263   :  { %533 = vsyncadd [#allocation14], 4294967040 }
 0x264   :  { %376 = vsyncpa [#allocation13], 1 }
 0x265   :  { %377 = vsyncpa [#allocation16], 1 }
 0x266   :  { %378 = vsyncpa [#allocation14], 1 }

</bundles_post_ra>
